<compile_context>
chip_gen: v5e
topology: v5e:2x2
jax: 0.10.0
libtpu: 0.0.40
codegen_flags: <defaults>
</compile_context>

<pallas_src>
import jax
import jax.numpy as jnp
from jax.experimental import pallas as pl
from jax.experimental.pallas import tpu as pltpu


def _round_up(n, m):
    return ((n + m - 1) // m) * m


def linear_kernel(x_ref, w_ref, b_ref, o_ref):
    # y = x @ W_t + b with W_t = W.T pre-transposed at init (H, O):
    # plain row-major MXU matmul with f32 accumulation, bias-add epilogue.
    y = jnp.dot(x_ref[...], w_ref[...], preferred_element_type=jnp.float32)
    o_ref[...] = (y + b_ref[...]).astype(o_ref.dtype)


def prepare_classifier_params(weight, bias):
    """One-time (init-time) parameter prep, hoisted out of the forward path.

    weight: (O, H) torch nn.Linear layout  ->  (H, O) pre-transposed
    bias:   (O,)                            ->  (1, O) row
    """
    return jnp.asarray(weight).T, jnp.asarray(bias).reshape(1, -1)


def classifier_forward(x, w_t, b_row, *, tm=1024):
    """Pallas implementation of Classifier.forward: fc3(x) = x @ W^T + b.

    x:     (B, H)  activations
    w_t:   (H, O)  pre-transposed weight (from prepare_classifier_params)
    b_row: (1, O)  bias as a row
    """
    B, H = x.shape
    H2, O = w_t.shape
    assert H == H2, (H, H2)
    assert b_row.shape == (1, O), b_row.shape

    # Batch tile: sublane-aligned, capped at the (8-aligned) batch. For larger
    # batches force >=2 grid steps so v7x megacore can shard across both TCs.
    B_min = _round_up(B, 8)
    tm = min(_round_up(tm, 8), B_min)
    if B_min // tm < 2 and B_min >= 16:
        tm = _round_up(B_min // 2, 8)
    B_pad = _round_up(B, tm)

    # Only pads when B is not a multiple of the tile (never at B=8 here).
    x_p = x if B_pad == B else jnp.pad(x, ((0, B_pad - B), (0, 0)))

    out = pl.pallas_call(
        linear_kernel,
        out_shape=jax.ShapeDtypeStruct((B_pad, O), x.dtype),
        grid_spec=pl.GridSpec(
            grid=(B_pad // tm,),
            in_specs=[
                # activations: tiled over the batch dimension
                pl.BlockSpec((tm, H), lambda i: (i, 0)),
                # weight / bias: full-array blocks, constant index -> resident
                pl.BlockSpec((H, O), lambda i: (0, 0)),
                pl.BlockSpec((1, O), lambda i: (0, 0)),
            ],
            out_specs=pl.BlockSpec((tm, O), lambda i: (i, 0)),
        ),
        compiler_params=pltpu.CompilerParams(
            dimension_semantics=("parallel",),
        ),
    )(x_p, w_t, b_row)
    return out if B_pad == B else out[:B]


if __name__ == "__main__":
    hidden_dims = 32
    output_dim = 14
    batch = 8

    key = jax.random.PRNGKey(0)
    kx, kw, kb = jax.random.split(key, 3)

    # Deterministic synthetic parameters (shapes match nn.Linear(hidden_dims, output_dim))
    x = jax.random.normal(kx, (batch, hidden_dims), dtype=jnp.float32)
    weight = jax.random.normal(kw, (output_dim, hidden_dims), dtype=jnp.float32) * 0.1
    bias = jax.random.normal(kb, (output_dim,), dtype=jnp.float32) * 0.1

    # One-time parameter prep (init-time); the per-call forward has no pads/slices.
    w_t, b_row = prepare_classifier_params(weight, bias)

    out = jax.block_until_ready(classifier_forward(x, w_t, b_row))

    # Sanity check against plain JAX reference
    ref = x @ weight.T + bias
    assert out.shape == (batch, output_dim), out.shape
    assert jnp.allclose(out, ref, atol=1e-5, rtol=1e-5)

    print("KERNEL_OK")
</pallas_src>

<mosaic_0001>
module attributes {stable_mosaic.version = 11 : i64} {
  func.func @linear_kernel(%arg0: i32, %arg1: memref<8x32xf32, #tpu.memory_space<vmem>>, %arg2: memref<32x14xf32, #tpu.memory_space<vmem>>, %arg3: memref<1x14xf32, #tpu.memory_space<vmem>>, %arg4: memref<8x14xf32, #tpu.memory_space<vmem>>) attributes {dimension_semantics = [#tpu.dimension_semantics<parallel>], iteration_bounds = array<i64: 1>, scalar_prefetch = 0 : i64, scratch_operands = 0 : i64, tpu.core_type = #tpu.core_type<tc>, window_params = [{transform_indices = @transform_0, window_bounds = array<i64: 8, 32>}, {pipeline_mode = #tpu.pipeline_mode<synchronous>, transform_indices = @transform_1, window_bounds = array<i64: 32, 14>}, {pipeline_mode = #tpu.pipeline_mode<synchronous>, transform_indices = @transform_2, window_bounds = array<i64: 1, 14>}, {transform_indices = @transform_3, window_bounds = array<i64: 8, 14>}]} {
    %c0 = arith.constant 0 : index
    %c0_0 = arith.constant 0 : index
    %0 = vector.load %arg1[%c0, %c0_0] : memref<8x32xf32, #tpu.memory_space<vmem>>, vector<8x32xf32>
    %c0_1 = arith.constant 0 : index
    %c0_2 = arith.constant 0 : index
    %1 = vector.load %arg2[%c0_1, %c0_2] : memref<32x14xf32, #tpu.memory_space<vmem>>, vector<32x14xf32>
    %cst = arith.constant dense<0.000000e+00> : vector<8x14xf32>
    %2 = tpu.matmul %0, %1, %cst {dimension_numbers = #tpu.dot_dimension_numbers<[1], [0], [0], [1], [0, 0, 1, 1], [], []>} : vector<8x32xf32>, vector<32x14xf32>, vector<8x14xf32> -> vector<8x14xf32>
    %c0_3 = arith.constant 0 : index
    %c0_4 = arith.constant 0 : index
    %3 = vector.load %arg3[%c0_3, %c0_4] : memref<1x14xf32, #tpu.memory_space<vmem>>, vector<1x14xf32>
    %4 = vector.broadcast %3 : vector<1x14xf32> to vector<8x14xf32>
    %5 = arith.addf %2, %4 : vector<8x14xf32>
    %c0_5 = arith.constant 0 : index
    %c0_6 = arith.constant 0 : index
    %6 = vector.load %arg4[%c0_5, %c0_6] : memref<8x14xf32, #tpu.memory_space<vmem>>, vector<8x14xf32>
    tpu.vector_store %arg4[%c0_5, %c0_6], %5 {strides = array<i32>} : memref<8x14xf32, #tpu.memory_space<vmem>>, vector<8x14xf32>,
    return
  }
  func.func @transform_0(%arg0: i32) -> (i32, i32) {
    %c0_i32 = arith.constant 0 : i32
    %c0_i32_0 = arith.constant 0 : i32
    return %arg0, %c0_i32 : i32, i32
  }
  func.func @transform_1(%arg0: i32) -> (i32, i32) {
    %c0_i32 = arith.constant 0 : i32
    %c0_i32_0 = arith.constant 0 : i32
    %c0_i32_1 = arith.constant 0 : i32
    return %c0_i32, %c0_i32_0 : i32, i32
  }
  func.func @transform_2(%arg0: i32) -> (i32, i32) {
    %c0_i32 = arith.constant 0 : i32
    %c0_i32_0 = arith.constant 0 : i32
    %c0_i32_1 = arith.constant 0 : i32
    return %c0_i32, %c0_i32_0 : i32, i32
  }
  func.func @transform_3(%arg0: i32) -> (i32, i32) {
    %c0_i32 = arith.constant 0 : i32
    %c0_i32_0 = arith.constant 0 : i32
    return %arg0, %c0_i32 : i32, i32
  }
}

</mosaic_0001>

<bundles_post_ra>
// kernel: tpu_custom_call.1
= control target key start
LH: loop header
LB: loop body
LE: loop exit
PB: predicated region body
PF: predicated region fallthrough
CT: control target
= control target key end

     0   :  { %s137_s0 = inlined_call_operand.vmem [shape: f32[8,32], index: 0, kind: input, shape index: {}]   ;;  %s138_s1 = inlined_call_operand.vmem [shape: f32[32,14], index: 1, kind: input, shape index: {}]   ;;  %s139_s2 = inlined_call_operand.vmem [shape: f32[1,14], index: 2, kind: input, shape index: {}]   ;;  %s140_s3 = inlined_call_operand.hbm [shape: f32[8,14], index: 3, kind: output, shape index: {}]  }
   0x1   :  { %v19_v0 = vld [vmem:[%s138_s1 + $0x18] sm:$0xff]  ;;  %v18_v1 = vld [vmem:[%s138_s1 + $0x10] sm:$0xff]  ;;  %v17_v2 = vld [vmem:[%s138_s1 + $0x8] sm:$0xff] }
   0x2   :  { %40 = vmatpush.msra.mxu0 %v19_v0 }
   0x3   :  { %8 = vsyncpa [#allocation3], 0  ;;  %v16_v3 = vld [vmem:[%s138_s1] sm:$0xff]  ;;  %vm24_vm0 = vcmask 261120   ;;  %s95_s24 = smov [#allocation2]   ;;  %s57_s28 = sshll.u32 %s140_s3, 4  ;;  %s58_s28 = int_to_ptr.hbm [resolvable:$true] %s57_s28 }
   0x4   :  { %41 = vmatpush.msra.mxu0 %v18_v1  ;;  %v15_v4 = vld [vmem:[%s137_s0] sm:$0xff]  ;;  %s55_s25 = sshll.u32 %s95_s24, 4  ;;  %vm48_vm1 = vcmask 113664   ;;  %s56_s25 = int_to_ptr.vmem [resolvable:$true] %s55_s25 }
   0x5   :  { %v68_v5 = vld [vmem:[%s139_s2] ss:$0 sm:$0xff] }
   0x6   :  { %42 = vmatpush.msra.mxu0 %v17_v2 }
   0x8   :  { %43 = vmatpush.msra.mxu0 %v16_v3 }
   0x9   :  { %66 = vmatmul.msk.f32.vlgmr.msra.gmra.mxu0 %vm24_vm0, %v15_v4 }
  0x86   :  { %v45_v6 = vpop.f32.mrf.mxu0 }
  0x87   :  { %v46_v7 = vadd.f32 %v68_v5, %v45_v6 }
  0x89   :  { %49 = vst.msk [vmem:[#allocation2] sm:$0xff] %vm48_vm1, %v46_v7 }
  0x8a   :  { %60 = dma.vmem_to_hbm [thread:$0]  %s56_s25, 128, %s58_s28, [#allocation3]  }
  0x8b   :  { %93 = dma.done.wait [#allocation3], 128  }
  0x8c   :  { %94 = vsyncadd [#allocation3], 4294967168 }
  0x8d   :  { %65 = vsyncpa [#allocation3], 1 }

</bundles_post_ra>
